<compile_context>
chip_gen: v7x
topology: tpu7x:2x2x1
jax: 0.10.0
libtpu: 0.0.40
codegen_flags: <defaults>
</compile_context>

<pallas_src>
import functools

import numpy as np
import jax
import jax.numpy as jnp
from jax import lax
from jax.experimental import pallas as pl
from jax.experimental.pallas import tpu as pltpu

EMB_DIM = 300


def rnn_attn_kernel(emb_ref, wih_ref, whh_ref, bsum_ref,
                    wa1_ref, ba1_ref, wa2_ref, ba2_ref,
                    wf1_ref, bf1_ref, wf2_ref, bf2_ref,
                    out_ref,
                    seq_scr, *, T, B):
    """RNN recurrence + attention + MLP head, single program.

    emb_ref: (T*B, D) time-major flattened embedded inputs
    wih/whh/wa1/wf1: weights transposed to (in, out); wf2_ref is torch-layout (1, H)
    bsum_ref: (1, H) pre-summed b_ih + b_hh; other biases are (1, out)
    out_ref: (1, B) lane-dense logits
    seq_scr: (T*B, H) RNN output sequence (time-major rows: t*B + b)
    """
    H = whh_ref.shape[0]
    f32 = jnp.float32

    # ---- Phase 1: hoisted input projection — one dense MXU matmul, both RNN
    # biases folded in (loop-invariant).
    xw = jnp.dot(emb_ref[...], wih_ref[...], preferred_element_type=f32) + bsum_ref[...]

    # ---- Phase 2: serial recurrence. Only (B,H)@(H,H) + tanh per step remains
    # on the critical path. T is small & static -> full static unroll so the
    # scheduler can overlap MXU pop / EUP tanh / scratch store across steps.
    # (For large T, switch to lax.fori_loop(..., unroll=k) over dynamic slices.)
    h = jnp.zeros((B, H), f32)
    for t in range(T):
        lo = t * B                                   # 8-aligned (B padded to >=8)
        h = jnp.tanh(xw[lo:lo + B, :]
                     + jnp.dot(h, whh_ref[...], preferred_element_type=f32))
        seq_scr[lo:lo + B, :] = h

    # ---- Phase 3: attention, batched over the whole sequence (one matmul each
    # instead of T tiny ones inside the loop).
    seq = seq_scr[...]                               # (T*B, H), lane-dense
    a1 = jnp.tanh(jnp.dot(seq, wa1_ref[...], preferred_element_type=f32)
                  + ba1_ref[...])                    # (T*B, H//2)
    scores = (jnp.dot(a1, wa2_ref[...], preferred_element_type=f32)
              + ba2_ref[...])                        # (T*B, 1)

    # Softmax over time (rows are time-major: row = t*B + b), via 8-aligned
    # static (B, .) slices — no reshape/relayout of degenerate last-dim arrays.
    s_t = [scores[t * B:(t + 1) * B, :] for t in range(T)]      # T x (B, 1)
    m = s_t[0]
    for t in range(1, T):
        m = jnp.maximum(m, s_t[t])
    e_t = [jnp.exp(s_t[t] - m) for t in range(T)]
    denom = e_t[0]
    for t in range(1, T):
        denom = denom + e_t[t]
    inv = pl.reciprocal(denom, approx=True)                     # (B, 1), EUP

    ctx = (e_t[0] * inv) * seq[0:B, :]
    for t in range(1, T):
        ctx = ctx + (e_t[t] * inv) * seq[t * B:(t + 1) * B, :]  # (B, H)

    # ---- Phase 4: fc1 -> relu -> fc2; emit output lane-dense as (1, B).
    h1 = jnp.maximum(jnp.dot(ctx, wf1_ref[...], preferred_element_type=f32)
                     + bf1_ref[...], 0.0)                       # (B, H)
    out_ref[...] = (lax.dot_general(
        wf2_ref[...], h1,
        dimension_numbers=(((1,), (1,)), ((), ())),
        preferred_element_type=f32) + bf2_ref[...])             # (1, B)


def rnn_forward(x_tokens, p):
    """Glue: embedding gather (plain JAX) + one pallas_call for the hot path."""
    B, T = x_tokens.shape
    D = p["embedding"].shape[1]
    H = p["w_hh_t"].shape[0]

    # Pad batch to >= 8 rows so every (B, .) slab is sublane-aligned.
    B_pad = max(8, ((B + 7) // 8) * 8)
    tok = jnp.zeros((B_pad, T), x_tokens.dtype).at[:B].set(x_tokens)

    # Gather the embedding already time-major (only the tiny token matrix is
    # transposed), then flatten to (T*B_pad, D) for the single hoisted matmul.
    emb = p["embedding"][tok.T].astype(jnp.float32).reshape(T * B_pad, D)

    bias_sum = (p["b_ih"] + p["b_hh"])[None, :]                 # fold b_ih + b_hh

    vmem = pl.BlockSpec(memory_space=pltpu.MemorySpace.VMEM)
    args = (emb,
            p["w_ih_t"], p["w_hh_t"], bias_sum,
            p["wa1_t"], p["ba1"][None, :],
            p["wa2_t"], p["ba2"][None, :],
            p["wf1_t"], p["bf1"][None, :],
            p["wf2_row"], p["bf2"][None, :])

    kernel = functools.partial(rnn_attn_kernel, T=T, B=B_pad)
    out = pl.pallas_call(
        kernel,
        out_shape=jax.ShapeDtypeStruct((1, B_pad), jnp.float32),
        in_specs=[vmem] * len(args),
        out_specs=pl.BlockSpec(memory_space=pltpu.MemorySpace.VMEM),
        scratch_shapes=[
            pltpu.VMEM((T * B_pad, H), jnp.float32),   # RNN output sequence
        ],
        # TODO(synk): for production B >> 8, add a parallel grid over batch
        # blocks (dimension_semantics=("parallel",)) and stream emb over T.
    )(*args)
    return out[0, :B]                                           # == torch .flatten()


def reference_forward(x_tokens, p):
    """Pure-JAX reference for correctness check."""
    h = p["embedding"][x_tokens].astype(jnp.float32)            # (B, T, D)
    B = h.shape[0]
    H = p["w_hh_t"].shape[0]

    def cell(h_prev, x_t):
        h_new = jnp.tanh(x_t @ p["w_ih_t"] + p["b_ih"]
                         + h_prev @ p["w_hh_t"] + p["b_hh"])
        return h_new, h_new

    h0 = jnp.zeros((B, H), jnp.float32)
    _, outs = lax.scan(cell, h0, jnp.transpose(h, (1, 0, 2)))
    outputs = jnp.transpose(outs, (1, 0, 2))                    # (B, T, H)
    a = jnp.tanh(outputs @ p["wa1_t"] + p["ba1"]) @ p["wa2_t"] + p["ba2"]
    alpha = jax.nn.softmax(a, axis=1)
    ctx = jnp.sum(alpha * outputs, axis=1)                      # (B, H)
    h1 = jnp.maximum(ctx @ p["wf1_t"] + p["bf1"], 0.0)
    return (h1 @ p["wf2_row"].T + p["bf2"]).reshape(-1)


def init_params(key, vocab=50, emb_dim=EMB_DIM, hidden=32):
    ks = jax.random.split(key, 12)
    s = 0.1
    half = hidden // 2
    return {
        "embedding": jax.random.normal(ks[0], (vocab, emb_dim), jnp.float32) * s,
        # nn.RNN weights are (H, in); stored transposed (in, H)
        "w_ih_t": jax.random.normal(ks[1], (emb_dim, hidden), jnp.float32) * s,
        "w_hh_t": jax.random.normal(ks[2], (hidden, hidden), jnp.float32) * s,
        "b_ih": jax.random.normal(ks[3], (hidden,), jnp.float32) * s,
        "b_hh": jax.random.normal(ks[4], (hidden,), jnp.float32) * s,
        # atten1: Linear(H, H/2); atten2: Linear(H/2, 1)   (stored transposed)
        "wa1_t": jax.random.normal(ks[5], (hidden, half), jnp.float32) * s,
        "ba1": jax.random.normal(ks[6], (half,), jnp.float32) * s,
        "wa2_t": jax.random.normal(ks[7], (half, 1), jnp.float32) * s,
        "ba2": jax.random.normal(ks[8], (1,), jnp.float32) * s,
        # fc1: Linear(H, H); fc2: Linear(H, 1) (fc2 kept in torch layout (1, H))
        "wf1_t": jax.random.normal(ks[9], (hidden, hidden), jnp.float32) * s,
        "bf1": jax.random.normal(ks[10], (hidden,), jnp.float32) * s,
        "wf2_row": jax.random.normal(ks[11], (1, hidden), jnp.float32) * s,
        "bf2": jnp.zeros((1,), jnp.float32),
    }


if __name__ == "__main__":
    key = jax.random.PRNGKey(0)
    k_param, k_tok = jax.random.split(key)

    B, T, VOCAB, HIDDEN = 2, 8, 50, 32
    params = init_params(k_param, vocab=VOCAB, hidden=HIDDEN)
    x_tokens = jax.random.randint(k_tok, (B, T), 0, VOCAB)      # token ids (B, T)

    y = rnn_forward(x_tokens, params)
    y = jax.block_until_ready(y)

    y_ref = jax.block_until_ready(reference_forward(x_tokens, params))
    assert y.shape == (B,)
    np.testing.assert_allclose(np.asarray(y), np.asarray(y_ref),
                               rtol=2e-3, atol=2e-3)
    print("KERNEL_OK")
</pallas_src>

<mosaic_0001>
module attributes {stable_mosaic.version = 11 : i64} {
  func.func @rnn_attn_kernel(%arg0: memref<64x300xf32, #tpu.memory_space<vmem>>, %arg1: memref<300x32xf32, #tpu.memory_space<vmem>>, %arg2: memref<32x32xf32, #tpu.memory_space<vmem>>, %arg3: memref<1x32xf32, #tpu.memory_space<vmem>>, %arg4: memref<32x16xf32, #tpu.memory_space<vmem>>, %arg5: memref<1x16xf32, #tpu.memory_space<vmem>>, %arg6: memref<16x1xf32, #tpu.memory_space<vmem>>, %arg7: memref<1x1xf32, #tpu.memory_space<vmem>>, %arg8: memref<32x32xf32, #tpu.memory_space<vmem>>, %arg9: memref<1x32xf32, #tpu.memory_space<vmem>>, %arg10: memref<1x32xf32, #tpu.memory_space<vmem>>, %arg11: memref<1x1xf32, #tpu.memory_space<vmem>>, %arg12: memref<1x8xf32, #tpu.memory_space<vmem>>, %arg13: memref<64x32xf32, #tpu.memory_space<vmem>>) attributes {dimension_semantics = [], scalar_prefetch = 0 : i64, scratch_operands = 1 : i64, tpu.core_type = #tpu.core_type<tc>} {
    %c0 = arith.constant 0 : index
    %c0_0 = arith.constant 0 : index
    %0 = vector.load %arg0[%c0, %c0_0] : memref<64x300xf32, #tpu.memory_space<vmem>>, vector<64x300xf32>
    %c0_1 = arith.constant 0 : index
    %c0_2 = arith.constant 0 : index
    %1 = vector.load %arg1[%c0_1, %c0_2] : memref<300x32xf32, #tpu.memory_space<vmem>>, vector<300x32xf32>
    %cst = arith.constant dense<0.000000e+00> : vector<64x32xf32>
    %2 = tpu.matmul %0, %1, %cst {dimension_numbers = #tpu.dot_dimension_numbers<[1], [0], [0], [1], [0, 0, 1, 1], [], []>} : vector<64x300xf32>, vector<300x32xf32>, vector<64x32xf32> -> vector<64x32xf32>
    %c0_3 = arith.constant 0 : index
    %c0_4 = arith.constant 0 : index
    %3 = vector.load %arg3[%c0_3, %c0_4] : memref<1x32xf32, #tpu.memory_space<vmem>>, vector<1x32xf32>
    %4 = vector.broadcast %3 : vector<1x32xf32> to vector<64x32xf32>
    %5 = arith.addf %2, %4 : vector<64x32xf32>
    %cst_5 = arith.constant 0.000000e+00 : f32
    %6 = vector.broadcast %cst_5 : f32 to vector<8x32xf32>
    %7 = vector.extract_strided_slice %5 {offsets = [0, 0], sizes = [8, 32], strides = [1, 1]} : vector<64x32xf32> to vector<8x32xf32>
    %c0_6 = arith.constant 0 : index
    %c0_7 = arith.constant 0 : index
    %8 = vector.load %arg2[%c0_6, %c0_7] : memref<32x32xf32, #tpu.memory_space<vmem>>, vector<32x32xf32>
    %cst_8 = arith.constant dense<0.000000e+00> : vector<8x32xf32>
    %9 = tpu.matmul %6, %8, %cst_8 {dimension_numbers = #tpu.dot_dimension_numbers<[1], [0], [0], [1], [0, 0, 1, 1], [], []>} : vector<8x32xf32>, vector<32x32xf32>, vector<8x32xf32> -> vector<8x32xf32>
    %10 = arith.addf %7, %9 : vector<8x32xf32>
    %11 = math.tanh %10 : vector<8x32xf32>
    %c0_9 = arith.constant 0 : index
    %c0_10 = arith.constant 0 : index
    %12 = vector.load %arg13[%c0_9, %c0_10] : memref<64x32xf32, #tpu.memory_space<vmem>>, vector<8x32xf32>
    tpu.vector_store %arg13[%c0_9, %c0_10], %11 {strides = array<i32>} : memref<64x32xf32, #tpu.memory_space<vmem>>, vector<8x32xf32>,
    %13 = vector.extract_strided_slice %5 {offsets = [8, 0], sizes = [8, 32], strides = [1, 1]} : vector<64x32xf32> to vector<8x32xf32>
    %c0_11 = arith.constant 0 : index
    %c0_12 = arith.constant 0 : index
    %14 = vector.load %arg2[%c0_11, %c0_12] : memref<32x32xf32, #tpu.memory_space<vmem>>, vector<32x32xf32>
    %cst_13 = arith.constant dense<0.000000e+00> : vector<8x32xf32>
    %15 = tpu.matmul %11, %14, %cst_13 {dimension_numbers = #tpu.dot_dimension_numbers<[1], [0], [0], [1], [0, 0, 1, 1], [], []>} : vector<8x32xf32>, vector<32x32xf32>, vector<8x32xf32> -> vector<8x32xf32>
    %16 = arith.addf %13, %15 : vector<8x32xf32>
    %17 = math.tanh %16 : vector<8x32xf32>
    %c8 = arith.constant 8 : index
    %c0_14 = arith.constant 0 : index
    %18 = vector.load %arg13[%c8, %c0_14] : memref<64x32xf32, #tpu.memory_space<vmem>>, vector<8x32xf32>
    tpu.vector_store %arg13[%c8, %c0_14], %17 {strides = array<i32>} : memref<64x32xf32, #tpu.memory_space<vmem>>, vector<8x32xf32>,
    %19 = vector.extract_strided_slice %5 {offsets = [16, 0], sizes = [8, 32], strides = [1, 1]} : vector<64x32xf32> to vector<8x32xf32>
    %c0_15 = arith.constant 0 : index
    %c0_16 = arith.constant 0 : index
    %20 = vector.load %arg2[%c0_15, %c0_16] : memref<32x32xf32, #tpu.memory_space<vmem>>, vector<32x32xf32>
    %cst_17 = arith.constant dense<0.000000e+00> : vector<8x32xf32>
    %21 = tpu.matmul %17, %20, %cst_17 {dimension_numbers = #tpu.dot_dimension_numbers<[1], [0], [0], [1], [0, 0, 1, 1], [], []>} : vector<8x32xf32>, vector<32x32xf32>, vector<8x32xf32> -> vector<8x32xf32>
    %22 = arith.addf %19, %21 : vector<8x32xf32>
    %23 = math.tanh %22 : vector<8x32xf32>
    %c16 = arith.constant 16 : index
    %c0_18 = arith.constant 0 : index
    %24 = vector.load %arg13[%c16, %c0_18] : memref<64x32xf32, #tpu.memory_space<vmem>>, vector<8x32xf32>
    tpu.vector_store %arg13[%c16, %c0_18], %23 {strides = array<i32>} : memref<64x32xf32, #tpu.memory_space<vmem>>, vector<8x32xf32>,
    %25 = vector.extract_strided_slice %5 {offsets = [24, 0], sizes = [8, 32], strides = [1, 1]} : vector<64x32xf32> to vector<8x32xf32>
    %c0_19 = arith.constant 0 : index
    %c0_20 = arith.constant 0 : index
    %26 = vector.load %arg2[%c0_19, %c0_20] : memref<32x32xf32, #tpu.memory_space<vmem>>, vector<32x32xf32>
    %cst_21 = arith.constant dense<0.000000e+00> : vector<8x32xf32>
    %27 = tpu.matmul %23, %26, %cst_21 {dimension_numbers = #tpu.dot_dimension_numbers<[1], [0], [0], [1], [0, 0, 1, 1], [], []>} : vector<8x32xf32>, vector<32x32xf32>, vector<8x32xf32> -> vector<8x32xf32>
    %28 = arith.addf %25, %27 : vector<8x32xf32>
    %29 = math.tanh %28 : vector<8x32xf32>
    %c24 = arith.constant 24 : index
    %c0_22 = arith.constant 0 : index
    %30 = vector.load %arg13[%c24, %c0_22] : memref<64x32xf32, #tpu.memory_space<vmem>>, vector<8x32xf32>
    tpu.vector_store %arg13[%c24, %c0_22], %29 {strides = array<i32>} : memref<64x32xf32, #tpu.memory_space<vmem>>, vector<8x32xf32>,
    %31 = vector.extract_strided_slice %5 {offsets = [32, 0], sizes = [8, 32], strides = [1, 1]} : vector<64x32xf32> to vector<8x32xf32>
    %c0_23 = arith.constant 0 : index
    %c0_24 = arith.constant 0 : index
    %32 = vector.load %arg2[%c0_23, %c0_24] : memref<32x32xf32, #tpu.memory_space<vmem>>, vector<32x32xf32>
    %cst_25 = arith.constant dense<0.000000e+00> : vector<8x32xf32>
    %33 = tpu.matmul %29, %32, %cst_25 {dimension_numbers = #tpu.dot_dimension_numbers<[1], [0], [0], [1], [0, 0, 1, 1], [], []>} : vector<8x32xf32>, vector<32x32xf32>, vector<8x32xf32> -> vector<8x32xf32>
    %34 = arith.addf %31, %33 : vector<8x32xf32>
    %35 = math.tanh %34 : vector<8x32xf32>
    %c32 = arith.constant 32 : index
    %c0_26 = arith.constant 0 : index
    %36 = vector.load %arg13[%c32, %c0_26] : memref<64x32xf32, #tpu.memory_space<vmem>>, vector<8x32xf32>
    tpu.vector_store %arg13[%c32, %c0_26], %35 {strides = array<i32>} : memref<64x32xf32, #tpu.memory_space<vmem>>, vector<8x32xf32>,
    %37 = vector.extract_strided_slice %5 {offsets = [40, 0], sizes = [8, 32], strides = [1, 1]} : vector<64x32xf32> to vector<8x32xf32>
    %c0_27 = arith.constant 0 : index
    %c0_28 = arith.constant 0 : index
    %38 = vector.load %arg2[%c0_27, %c0_28] : memref<32x32xf32, #tpu.memory_space<vmem>>, vector<32x32xf32>
    %cst_29 = arith.constant dense<0.000000e+00> : vector<8x32xf32>
    %39 = tpu.matmul %35, %38, %cst_29 {dimension_numbers = #tpu.dot_dimension_numbers<[1], [0], [0], [1], [0, 0, 1, 1], [], []>} : vector<8x32xf32>, vector<32x32xf32>, vector<8x32xf32> -> vector<8x32xf32>
    %40 = arith.addf %37, %39 : vector<8x32xf32>
    %41 = math.tanh %40 : vector<8x32xf32>
    %c40 = arith.constant 40 : index
    %c0_30 = arith.constant 0 : index
    %42 = vector.load %arg13[%c40, %c0_30] : memref<64x32xf32, #tpu.memory_space<vmem>>, vector<8x32xf32>
    tpu.vector_store %arg13[%c40, %c0_30], %41 {strides = array<i32>} : memref<64x32xf32, #tpu.memory_space<vmem>>, vector<8x32xf32>,
    %43 = vector.extract_strided_slice %5 {offsets = [48, 0], sizes = [8, 32], strides = [1, 1]} : vector<64x32xf32> to vector<8x32xf32>
    %c0_31 = arith.constant 0 : index
    %c0_32 = arith.constant 0 : index
    %44 = vector.load %arg2[%c0_31, %c0_32] : memref<32x32xf32, #tpu.memory_space<vmem>>, vector<32x32xf32>
    %cst_33 = arith.constant dense<0.000000e+00> : vector<8x32xf32>
    %45 = tpu.matmul %41, %44, %cst_33 {dimension_numbers = #tpu.dot_dimension_numbers<[1], [0], [0], [1], [0, 0, 1, 1], [], []>} : vector<8x32xf32>, vector<32x32xf32>, vector<8x32xf32> -> vector<8x32xf32>
    %46 = arith.addf %43, %45 : vector<8x32xf32>
    %47 = math.tanh %46 : vector<8x32xf32>
    %c48 = arith.constant 48 : index
    %c0_34 = arith.constant 0 : index
    %48 = vector.load %arg13[%c48, %c0_34] : memref<64x32xf32, #tpu.memory_space<vmem>>, vector<8x32xf32>
    tpu.vector_store %arg13[%c48, %c0_34], %47 {strides = array<i32>} : memref<64x32xf32, #tpu.memory_space<vmem>>, vector<8x32xf32>,
    %49 = vector.extract_strided_slice %5 {offsets = [56, 0], sizes = [8, 32], strides = [1, 1]} : vector<64x32xf32> to vector<8x32xf32>
    %c0_35 = arith.constant 0 : index
    %c0_36 = arith.constant 0 : index
    %50 = vector.load %arg2[%c0_35, %c0_36] : memref<32x32xf32, #tpu.memory_space<vmem>>, vector<32x32xf32>
    %cst_37 = arith.constant dense<0.000000e+00> : vector<8x32xf32>
    %51 = tpu.matmul %47, %50, %cst_37 {dimension_numbers = #tpu.dot_dimension_numbers<[1], [0], [0], [1], [0, 0, 1, 1], [], []>} : vector<8x32xf32>, vector<32x32xf32>, vector<8x32xf32> -> vector<8x32xf32>
    %52 = arith.addf %49, %51 : vector<8x32xf32>
    %53 = math.tanh %52 : vector<8x32xf32>
    %c56 = arith.constant 56 : index
    %c0_38 = arith.constant 0 : index
    %54 = vector.load %arg13[%c56, %c0_38] : memref<64x32xf32, #tpu.memory_space<vmem>>, vector<8x32xf32>
    tpu.vector_store %arg13[%c56, %c0_38], %53 {strides = array<i32>} : memref<64x32xf32, #tpu.memory_space<vmem>>, vector<8x32xf32>,
    %c0_39 = arith.constant 0 : index
    %c0_40 = arith.constant 0 : index
    %55 = vector.load %arg13[%c0_39, %c0_40] : memref<64x32xf32, #tpu.memory_space<vmem>>, vector<64x32xf32>
    %c0_41 = arith.constant 0 : index
    %c0_42 = arith.constant 0 : index
    %56 = vector.load %arg4[%c0_41, %c0_42] : memref<32x16xf32, #tpu.memory_space<vmem>>, vector<32x16xf32>
    %cst_43 = arith.constant dense<0.000000e+00> : vector<64x16xf32>
    %57 = tpu.matmul %55, %56, %cst_43 {dimension_numbers = #tpu.dot_dimension_numbers<[1], [0], [0], [1], [0, 0, 1, 1], [], []>} : vector<64x32xf32>, vector<32x16xf32>, vector<64x16xf32> -> vector<64x16xf32>
    %c0_44 = arith.constant 0 : index
    %c0_45 = arith.constant 0 : index
    %58 = vector.load %arg5[%c0_44, %c0_45] : memref<1x16xf32, #tpu.memory_space<vmem>>, vector<1x16xf32>
    %59 = vector.broadcast %58 : vector<1x16xf32> to vector<64x16xf32>
    %60 = arith.addf %57, %59 : vector<64x16xf32>
    %61 = math.tanh %60 : vector<64x16xf32>
    %c0_46 = arith.constant 0 : index
    %c0_47 = arith.constant 0 : index
    %62 = vector.load %arg6[%c0_46, %c0_47] : memref<16x1xf32, #tpu.memory_space<vmem>>, vector<16x1xf32>
    %cst_48 = arith.constant dense<0.000000e+00> : vector<64x1xf32>
    %63 = tpu.matmul %61, %62, %cst_48 {dimension_numbers = #tpu.dot_dimension_numbers<[1], [0], [0], [1], [0, 0, 1, 1], [], []>} : vector<64x16xf32>, vector<16x1xf32>, vector<64x1xf32> -> vector<64x1xf32>
    %c0_49 = arith.constant 0 : index
    %c0_50 = arith.constant 0 : index
    %64 = vector.load %arg7[%c0_49, %c0_50] : memref<1x1xf32, #tpu.memory_space<vmem>>, vector<1x1xf32>
    %65 = vector.broadcast %64 : vector<1x1xf32> to vector<64x1xf32>
    %66 = arith.addf %63, %65 : vector<64x1xf32>
    %67 = vector.extract_strided_slice %66 {offsets = [0, 0], sizes = [8, 1], strides = [1, 1]} : vector<64x1xf32> to vector<8x1xf32>
    %68 = vector.extract_strided_slice %66 {offsets = [8, 0], sizes = [8, 1], strides = [1, 1]} : vector<64x1xf32> to vector<8x1xf32>
    %69 = vector.extract_strided_slice %66 {offsets = [16, 0], sizes = [8, 1], strides = [1, 1]} : vector<64x1xf32> to vector<8x1xf32>
    %70 = vector.extract_strided_slice %66 {offsets = [24, 0], sizes = [8, 1], strides = [1, 1]} : vector<64x1xf32> to vector<8x1xf32>
    %71 = vector.extract_strided_slice %66 {offsets = [32, 0], sizes = [8, 1], strides = [1, 1]} : vector<64x1xf32> to vector<8x1xf32>
    %72 = vector.extract_strided_slice %66 {offsets = [40, 0], sizes = [8, 1], strides = [1, 1]} : vector<64x1xf32> to vector<8x1xf32>
    %73 = vector.extract_strided_slice %66 {offsets = [48, 0], sizes = [8, 1], strides = [1, 1]} : vector<64x1xf32> to vector<8x1xf32>
    %74 = vector.extract_strided_slice %66 {offsets = [56, 0], sizes = [8, 1], strides = [1, 1]} : vector<64x1xf32> to vector<8x1xf32>
    %75 = arith.maximumf %67, %68 : vector<8x1xf32>
    %76 = arith.maximumf %75, %69 : vector<8x1xf32>
    %77 = arith.maximumf %76, %70 : vector<8x1xf32>
    %78 = arith.maximumf %77, %71 : vector<8x1xf32>
    %79 = arith.maximumf %78, %72 : vector<8x1xf32>
    %80 = arith.maximumf %79, %73 : vector<8x1xf32>
    %81 = arith.maximumf %80, %74 : vector<8x1xf32>
    %82 = arith.subf %67, %81 : vector<8x1xf32>
    %83 = math.exp %82 : vector<8x1xf32>
    %84 = arith.subf %68, %81 : vector<8x1xf32>
    %85 = math.exp %84 : vector<8x1xf32>
    %86 = arith.subf %69, %81 : vector<8x1xf32>
    %87 = math.exp %86 : vector<8x1xf32>
    %88 = arith.subf %70, %81 : vector<8x1xf32>
    %89 = math.exp %88 : vector<8x1xf32>
    %90 = arith.subf %71, %81 : vector<8x1xf32>
    %91 = math.exp %90 : vector<8x1xf32>
    %92 = arith.subf %72, %81 : vector<8x1xf32>
    %93 = math.exp %92 : vector<8x1xf32>
    %94 = arith.subf %73, %81 : vector<8x1xf32>
    %95 = math.exp %94 : vector<8x1xf32>
    %96 = arith.subf %74, %81 : vector<8x1xf32>
    %97 = math.exp %96 : vector<8x1xf32>
    %98 = arith.addf %83, %85 : vector<8x1xf32>
    %99 = arith.addf %98, %87 : vector<8x1xf32>
    %100 = arith.addf %99, %89 : vector<8x1xf32>
    %101 = arith.addf %100, %91 : vector<8x1xf32>
    %102 = arith.addf %101, %93 : vector<8x1xf32>
    %103 = arith.addf %102, %95 : vector<8x1xf32>
    %104 = arith.addf %103, %97 : vector<8x1xf32>
    %105 = tpu.reciprocal %104 {approx = true} : vector<8x1xf32> -> vector<8x1xf32>
    %106 = arith.mulf %83, %105 : vector<8x1xf32>
    %107 = vector.extract_strided_slice %55 {offsets = [0, 0], sizes = [8, 32], strides = [1, 1]} : vector<64x32xf32> to vector<8x32xf32>
    %108 = vector.broadcast %106 : vector<8x1xf32> to vector<8x32xf32>
    %109 = arith.mulf %108, %107 : vector<8x32xf32>
    %110 = arith.mulf %85, %105 : vector<8x1xf32>
    %111 = vector.extract_strided_slice %55 {offsets = [8, 0], sizes = [8, 32], strides = [1, 1]} : vector<64x32xf32> to vector<8x32xf32>
    %112 = vector.broadcast %110 : vector<8x1xf32> to vector<8x32xf32>
    %113 = arith.mulf %112, %111 : vector<8x32xf32>
    %114 = arith.addf %109, %113 : vector<8x32xf32>
    %115 = arith.mulf %87, %105 : vector<8x1xf32>
    %116 = vector.extract_strided_slice %55 {offsets = [16, 0], sizes = [8, 32], strides = [1, 1]} : vector<64x32xf32> to vector<8x32xf32>
    %117 = vector.broadcast %115 : vector<8x1xf32> to vector<8x32xf32>
    %118 = arith.mulf %117, %116 : vector<8x32xf32>
    %119 = arith.addf %114, %118 : vector<8x32xf32>
    %120 = arith.mulf %89, %105 : vector<8x1xf32>
    %121 = vector.extract_strided_slice %55 {offsets = [24, 0], sizes = [8, 32], strides = [1, 1]} : vector<64x32xf32> to vector<8x32xf32>
    %122 = vector.broadcast %120 : vector<8x1xf32> to vector<8x32xf32>
    %123 = arith.mulf %122, %121 : vector<8x32xf32>
    %124 = arith.addf %119, %123 : vector<8x32xf32>
    %125 = arith.mulf %91, %105 : vector<8x1xf32>
    %126 = vector.extract_strided_slice %55 {offsets = [32, 0], sizes = [8, 32], strides = [1, 1]} : vector<64x32xf32> to vector<8x32xf32>
    %127 = vector.broadcast %125 : vector<8x1xf32> to vector<8x32xf32>
    %128 = arith.mulf %127, %126 : vector<8x32xf32>
    %129 = arith.addf %124, %128 : vector<8x32xf32>
    %130 = arith.mulf %93, %105 : vector<8x1xf32>
    %131 = vector.extract_strided_slice %55 {offsets = [40, 0], sizes = [8, 32], strides = [1, 1]} : vector<64x32xf32> to vector<8x32xf32>
    %132 = vector.broadcast %130 : vector<8x1xf32> to vector<8x32xf32>
    %133 = arith.mulf %132, %131 : vector<8x32xf32>
    %134 = arith.addf %129, %133 : vector<8x32xf32>
    %135 = arith.mulf %95, %105 : vector<8x1xf32>
    %136 = vector.extract_strided_slice %55 {offsets = [48, 0], sizes = [8, 32], strides = [1, 1]} : vector<64x32xf32> to vector<8x32xf32>
    %137 = vector.broadcast %135 : vector<8x1xf32> to vector<8x32xf32>
    %138 = arith.mulf %137, %136 : vector<8x32xf32>
    %139 = arith.addf %134, %138 : vector<8x32xf32>
    %140 = arith.mulf %97, %105 : vector<8x1xf32>
    %141 = vector.extract_strided_slice %55 {offsets = [56, 0], sizes = [8, 32], strides = [1, 1]} : vector<64x32xf32> to vector<8x32xf32>
    %142 = vector.broadcast %140 : vector<8x1xf32> to vector<8x32xf32>
    %143 = arith.mulf %142, %141 : vector<8x32xf32>
    %144 = arith.addf %139, %143 : vector<8x32xf32>
    %c0_51 = arith.constant 0 : index
    %c0_52 = arith.constant 0 : index
    %145 = vector.load %arg8[%c0_51, %c0_52] : memref<32x32xf32, #tpu.memory_space<vmem>>, vector<32x32xf32>
    %cst_53 = arith.constant dense<0.000000e+00> : vector<8x32xf32>
    %146 = tpu.matmul %144, %145, %cst_53 {dimension_numbers = #tpu.dot_dimension_numbers<[1], [0], [0], [1], [0, 0, 1, 1], [], []>} : vector<8x32xf32>, vector<32x32xf32>, vector<8x32xf32> -> vector<8x32xf32>
    %c0_54 = arith.constant 0 : index
    %c0_55 = arith.constant 0 : index
    %147 = vector.load %arg9[%c0_54, %c0_55] : memref<1x32xf32, #tpu.memory_space<vmem>>, vector<1x32xf32>
    %148 = vector.broadcast %147 : vector<1x32xf32> to vector<8x32xf32>
    %149 = arith.addf %146, %148 : vector<8x32xf32>
    %cst_56 = arith.constant 0.000000e+00 : f32
    %150 = vector.broadcast %cst_56 : f32 to vector<8x32xf32>
    %151 = arith.maximumf %149, %150 : vector<8x32xf32>
    %c0_57 = arith.constant 0 : index
    %c0_58 = arith.constant 0 : index
    %152 = vector.load %arg10[%c0_57, %c0_58] : memref<1x32xf32, #tpu.memory_space<vmem>>, vector<1x32xf32>
    %cst_59 = arith.constant dense<0.000000e+00> : vector<1x8xf32>
    %153 = tpu.matmul %152, %151, %cst_59 {dimension_numbers = #tpu.dot_dimension_numbers<[1], [1], [0], [0], [0, 0, 1, 0], [], []>} : vector<1x32xf32>, vector<8x32xf32>, vector<1x8xf32> -> vector<1x8xf32>
    %c0_60 = arith.constant 0 : index
    %c0_61 = arith.constant 0 : index
    %154 = vector.load %arg11[%c0_60, %c0_61] : memref<1x1xf32, #tpu.memory_space<vmem>>, vector<1x1xf32>
    %155 = vector.broadcast %154 : vector<1x1xf32> to vector<1x8xf32>
    %156 = arith.addf %153, %155 : vector<1x8xf32>
    %c0_62 = arith.constant 0 : index
    %c0_63 = arith.constant 0 : index
    %157 = vector.load %arg12[%c0_62, %c0_63] : memref<1x8xf32, #tpu.memory_space<vmem>>, vector<1x8xf32>
    tpu.vector_store %arg12[%c0_62, %c0_63], %156 {strides = array<i32>} : memref<1x8xf32, #tpu.memory_space<vmem>>, vector<1x8xf32>,
    return
  }
}

</mosaic_0001>

<bundles_post_ra>
// kernel: tpu_custom_call.1
= control target key start
LH: loop header
LB: loop body
LE: loop exit
PB: predicated region body
PF: predicated region fallthrough
CT: control target
= control target key end

     0   :  { %s2604_s0 = inlined_call_operand.vmem [shape: f32[64,300], index: 0, kind: input, shape index: {}]   ;;  %s2605_s1 = inlined_call_operand.vmem [shape: f32[300,32], index: 1, kind: input, shape index: {}]   ;;  %s2606_s2 = inlined_call_operand.vmem [shape: f32[32,32], index: 2, kind: input, shape index: {}]   ;;  %s2607_s3 = inlined_call_operand.vmem [shape: f32[1,32], index: 3, kind: input, shape index: {}]   ;;  %s2608_s4 = inlined_call_operand.vmem [shape: f32[32,16], index: 4, kind: input, shape index: {}]   ;;  %s2609_s5 = inlined_call_operand.vmem [shape: f32[1,16], index: 5, kind: input, shape index: {}]   ;;  %s2610_s6 = inlined_call_operand.vmem [shape: f32[16,1], index: 6, kind: input, shape index: {}]   ;;  %s2611_s7 = inlined_call_operand.<no memory space> [shape: f32[1,1], index: 7, kind: input, shape index: {}]   ;;  %s2612_s8 = inlined_call_operand.vmem [shape: f32[32,32], index: 8, kind: input, shape index: {}]   ;;  %s2613_s9 = inlined_call_operand.vmem [shape: f32[1,32], index: 9, kind: input, shape index: {}]   ;;  %s2614_s10 = inlined_call_operand.vmem [shape: f32[1,32], index: 10, kind: input, shape index: {}]   ;;  %s2615_s12 = inlined_call_operand.hbm [shape: f32[1,8], index: 12, kind: output, shape index: {}]   ;;  %s2616_s11 = inlined_call_operand.<no memory space> [shape: f32[1,1], index: 11, kind: input, shape index: {}]  }
   0x1   :  { %v17_v0 = vstv %s2611_s7  ;;  %v19_v1 = vstv %s2616_s11 }
   0x2   :  { %18 = vst [vmem:[#allocation3] sm:$0x1] %v17_v0  ;;  %20 = vst [vmem:[#allocation4] sm:$0x1] %v19_v1 }
   0x3   :  { %v86_v2 = vld [vmem:[%s2605_s1 + $0x80] sm:$0xff]  ;;  %v87_v3 = vld [vmem:[%s2605_s1 + $0x88] sm:$0xff]  ;;  %v88_v7 = vld [vmem:[%s2605_s1 + $0x90] sm:$0xff]  ;;  %vm140_vm0 = vcmask 1043456   ;;  %vm115_vm1 = vcmask 359424   ;;  %vm2116_vm2 = vmmov 1  }
   0x4   :  { %v70_v4 = vld [vmem:[%s2605_s1] sm:$0xff]  ;;  %v1922_v5 = vpack.c.bf16 %v87_v3, %v86_v2  ;;  %v71_v6 = vld [vmem:[%s2605_s1 + $0x8] sm:$0xff]  ;;  %v89_v8 = vld [vmem:[%s2605_s1 + $0x98] sm:$0xff]  ;;  %v2117_v54 = vmov 0.0|0.0  }
   0x5   :  { %v1924_v9 = vpack.c.bf16 %v71_v6, %v70_v4  ;;  %v1926_v10 = vpack.c.bf16 %v89_v8, %v88_v7  ;;  %v72_v11 = vld [vmem:[%s2605_s1 + $0x10] sm:$0xff]  ;;  %v73_v12 = vld [vmem:[%s2605_s1 + $0x18] sm:$0xff]  ;;  %v90_v13 = vld [vmem:[%s2605_s1 + $0xa0] sm:$0xff] }
   0x6   :  { %1923 = vmatprep.subr.bf16.mxu0 %v1922_v5  ;;  %v91_v14 = vld [vmem:[%s2605_s1 + $0xa8] sm:$0xff]  ;;  %v1928_v15 = vpack.c.bf16 %v73_v12, %v72_v11  ;;  %v102_v16 = vld [vmem:[%s2605_s1 + $0x100] sm:$0xff]  ;;  %v92_v22 = vld [vmem:[%s2605_s1 + $0xb0] sm:$0xff] }
   0x7   :  { %1925 = vmatpush3.bf16.msra.mxu0 %v1924_v9  ;;  %v103_v17 = vld [vmem:[%s2605_s1 + $0x108] sm:$0xff]  ;;  %v1930_v18 = vpack.c.bf16 %v91_v14, %v90_v13  ;;  %v74_v19 = vld [vmem:[%s2605_s1 + $0x20] sm:$0xff]  ;;  %v93_v23 = vld [vmem:[%s2605_s1 + $0xb8] sm:$0xff] }
   0x8   :  { %1927 = vmatprep.subr.bf16.mxu0 %v1926_v10  ;;  %v75_v20 = vld [vmem:[%s2605_s1 + $0x28] sm:$0xff]  ;;  %v1954_v21 = vpack.c.bf16 %v103_v17, %v102_v16  ;;  %v104_v24 = vld [vmem:[%s2605_s1 + $0x110] sm:$0xff]  ;;  %v105_v25 = vld [vmem:[%s2605_s1 + $0x118] sm:$0xff]  ;;  %v1934_v30 = vpack.c.bf16 %v93_v23, %v92_v22 }
   0x9   :  { %v1958_v26 = vpack.c.bf16 %v105_v25, %v104_v24  ;;  %v1932_v27 = vpack.c.bf16 %v75_v20, %v74_v19  ;;  %v106_v28 = vld [vmem:[%s2605_s1 + $0x120] sm:$0xff]  ;;  %v107_v29 = vld [vmem:[%s2605_s1 + $0x128] sm:$0xf]  ;;  %v76_v31 = vld [vmem:[%s2605_s1 + $0x30] sm:$0xff] }
   0xa   :  { %1955 = vmatprep.subr.bf16.mxu1 %v1954_v21  ;;  %v77_v32 = vld [vmem:[%s2605_s1 + $0x38] sm:$0xff]  ;;  %v94_v33 = vld [vmem:[%s2605_s1 + $0xc0] sm:$0xff]  ;;  %v1962_v34 = vpack.c.bf16 %v107_v29, %v106_v28  ;;  %v95_v35 = vld [vmem:[%s2605_s1 + $0xc8] sm:$0xff] }
   0xb   :  { %1929 = vmatpush3.bf16.msra.mxu0 %v1928_v15  ;;  %1957 = vmatpush3.bf16.msra.mxu1 %v1954_v21  ;;  %vm2266_vm3 = vmpackc.low %vm140_vm0, %vm2116_vm2  ;;  %v48_v37 = vld [vmem:[%s2604_s0 + $0x10] sm:$0xff]  ;;  %v1936_v38 = vpack.c.bf16 %v77_v32, %v76_v31  ;;  %v1938_v39 = vpack.c.bf16 %v95_v35, %v94_v33  ;;  %v78_v40 = vld [vmem:[%s2605_s1 + $0x40] sm:$0xff] }
   0xc   :  { %1931 = vmatprep.subr.bf16.mxu0 %v1930_v18  ;;  %1959 = vmatprep.subr.bf16.mxu1 %v1958_v26  ;;  %v79_v41 = vld [vmem:[%s2605_s1 + $0x48] sm:$0xff]  ;;  %v96_v42 = vld [vmem:[%s2605_s1 + $0xd0] sm:$0xff]  ;;  %v97_v43 = vld [vmem:[%s2605_s1 + $0xd8] sm:$0xff] }
   0xd   :  { %1770 = vmatprep.mubr.msk.f32.mxu1 %vm115_vm1, %v48_v37  ;;  %v47_v44 = vld [vmem:[%s2604_s0 + $0x8] sm:$0xff]  ;;  %v354_v45 = vld [vmem:[%s2606_s2] sm:$0xff]  ;;  %v1940_v47 = vpack.c.bf16 %v79_v41, %v78_v40  ;;  %v80_v48 = vld [vmem:[%s2605_s1 + $0x50] sm:$0xff]  ;;  %v1942_v50 = vpack.c.bf16 %v97_v43, %v96_v42 }
   0xe   :  { %v355_v46 = vld [vmem:[%s2606_s2 + $0x8] sm:$0xff]  ;;  %v81_v51 = vld [vmem:[%s2605_s1 + $0x58] sm:$0xff]  ;;  %v98_v52 = vld [vmem:[%s2605_s1 + $0xe0] sm:$0xff]  ;;  %208 = vmatprep.mubr.f32.mxu0 %v47_v44 }
   0xf   :  { %1933 = vmatpush3.bf16.msra.mxu0 %v1932_v27  ;;  %1961 = vmatpush3.bf16.msra.mxu1 %v1958_v26  ;;  %v51_v49 = vld [vmem:[%s2604_s0 + $0x28] sm:$0xff]  ;;  %v54_v53 = vld [vmem:[%s2604_s0 + $0x40] sm:$0xff]  ;;  %v2315_v55 = vpack.c.bf16 %v355_v46, %v354_v45  ;;  %v356_v57 = vld [vmem:[%s2606_s2 + $0x10] sm:$0xff]  ;;  %v1944_v59 = vpack.c.bf16 %v81_v51, %v80_v48 }
  0x10   :  { %1935 = vmatprep.subr.bf16.mxu0 %v1934_v30  ;;  %1964 = vmatprep.subr.msk.bf16.mxu1 %vm2266_vm3, %v1962_v34  ;;  %v99_v56 = vld [vmem:[%s2605_s1 + $0xe8] sm:$0xff]  ;;  %v357_v58 = vld [vmem:[%s2606_s2 + $0x18] sm:$0xff]  ;;  %v82_v62 = vld [vmem:[%s2605_s1 + $0x60] sm:$0xff] }
  0x11   :  { %v57_v60 = vld [vmem:[%s2604_s0 + $0x58] sm:$0xff]  ;;  %v1946_v61 = vpack.c.bf16 %v99_v56, %v98_v52  ;;  %v83_v63 = vld [vmem:[%s2605_s1 + $0x68] sm:$0xff]  ;;  %v60_v0 = vld [vmem:[%s2604_s0 + $0x70] sm:$0xff]  ;;  %v2341_v1 = vpack.c.bf16 %v357_v58, %v356_v57 }
  0x12   :  { %v100_v2 = vld [vmem:[%s2605_s1 + $0xf0] sm:$0xff]  ;;  %v101_v3 = vld [vmem:[%s2605_s1 + $0xf8] sm:$0xff] }
  0x13   :  { %1937 = vmatpush3.bf16.msra.mxu0 %v1936_v38  ;;  %1967 = vmatpush3.bf16.msk.msra.mxu1 %vm2266_vm3, %v1962_v34 }
  0x14   :  { %1939 = vmatprep.subr.bf16.mxu0 %v1938_v39  ;;  %1968 = vmatprep.subr.bf16.mxu1 %v2117_v54 }
  0x16   :  { %1771 = vmatmul.mubr.msk.f32.vlgmr.msra.gmra.mrb[0].mxu1 %vm115_vm1, %v51_v49 }
  0x17   :  { %1941 = vmatpush3.bf16.msra.mxu0 %v1940_v47  ;;  %1773 = vmatprep.mubr.msk.f32.mxu1 %vm115_vm1, %v54_v53 }
  0x18   :  { %1943 = vmatprep.subr.bf16.mxu0 %v1942_v50  ;;  %1970 = vmatpush3.bf16.msra.mxu1 %v2315_v55 }
  0x19   :  { %1971 = vmatprep.subr.bf16.mxu1 %v2117_v54 }
  0x1a   :  { %21 = vsyncpa [#allocation6], 0  ;;  %1774 = vmatmul.mubr.msk.f32.gmra.mrb[2].mxu1 %vm115_vm1, %v57_v60  ;;  %v1948_v4 = vpack.c.bf16 %v83_v63, %v82_v62  ;;  %v63_v5 = vld [vmem:[%s2604_s0 + $0x88] sm:$0xff]  ;;  %v1950_v6 = vpack.c.bf16 %v101_v3, %v100_v2  ;;  %v84_v7 = vld [vmem:[%s2605_s1 + $0x70] sm:$0xff]  ;;  %vm2118_vm4 = vmmov 0   ;;  %v2119_v13 = vmov 0.0  }
  0x1b   :  { %1945 = vmatpush3.bf16.msra.mxu0 %v1944_v59  ;;  %1776 = vmatprep.mubr.msk.f32.mxu1 %vm115_vm1, %v60_v0  ;;  %v85_v8 = vld [vmem:[%s2605_s1 + $0x78] sm:$0xff]  ;;  %v66_v9 = vld [vmem:[%s2604_s0 + $0xa0] sm:$0xff]  ;;  %v52_v17 = vld [vmem:[%s2604_s0 + $0x30] sm:$0xff]  ;;  %vm358_vm5 = vcmask 261120   ;;  %vm1160_vm6 = vcmask 130048   ;;  %s2121_s13 = smov [#allocation5]  }
  0x1c   :  { %1947 = vmatprep.subr.bf16.mxu0 %v1946_v61  ;;  %1973 = vmatpush3.bf16.msra.mxu1 %v2341_v1  ;;  %v1952_v10 = vpack.c.bf16 %v85_v8, %v84_v7  ;;  %v69_v11 = vld [vmem:[%s2604_s0 + $0xb8] sm:$0xff]  ;;  %v46_v12 = vld [vmem:[%s2604_s0] sm:$0xff]  ;;  %v56_v18 = vld [vmem:[%s2604_s0 + $0x50] sm:$0xff]  ;;  %s1572_s11 = sshll.u32 %s2121_s13, 4  ;;  %vm1564_vm7 = vcmask 57344   ;;  %s1573_s11 = int_to_ptr.vmem [resolvable:$true] %s1572_s11 }
  0x1d   :  { %1974 = vmatprep.subr.bf16.mxu1 %v2117_v54  ;;  %v50_v14 = vld [vmem:[%s2604_s0 + $0x20] sm:$0xff]  ;;  %v49_v15 = vld [vmem:[%s2604_s0 + $0x18] sm:$0xff]  ;;  %v55_v19 = vld [vmem:[%s2604_s0 + $0x48] sm:$0xff]  ;;  %p2097_p1 = scmp.lt.s32.totalorder %s1573_s11, %s1573_s11 }
  0x1e   :  { %1777 = vmatmul.mubr.msk.f32.gmra.mrb[4].mxu1 %vm115_vm1, %v63_v5  ;;  %v53_v16 = vld [vmem:[%s2604_s0 + $0x38] sm:$0xff]  ;;  %v59_v20 = vld [vmem:[%s2604_s0 + $0x68] sm:$0xff]  ;;  %v58_v21 = vld [vmem:[%s2604_s0 + $0x60] sm:$0xff] }
  0x1f   :  { %1949 = vmatpush3.bf16.msra.mxu0 %v1948_v4  ;;  %1779 = vmatprep.mubr.msk.f32.mxu1 %vm115_vm1, %v66_v9  ;;  %v62_v22 = vld [vmem:[%s2604_s0 + $0x80] sm:$0xff]  ;;  %v61_v23 = vld [vmem:[%s2604_s0 + $0x78] sm:$0xff]  ;;  %v64_v25 = vld [vmem:[%s2604_s0 + $0x90] sm:$0xff] }
  0x20   :  { %1951 = vmatprep.subr.bf16.mxu0 %v1950_v6  ;;  %v65_v24 = vld [vmem:[%s2604_s0 + $0x98] sm:$0xff]  ;;  %v68_v26 = vld [vmem:[%s2604_s0 + $0xb0] sm:$0xff]  ;;  %v67_v27 = vld [vmem:[%s2604_s0 + $0xa8] sm:$0xff]  ;;  %s2096_s0 = scalar_lea.vmem %s1573_s11, 32 }
  0x21   :  { %v1580_v38 = vld [vmem:[%s2607_s3] ss:$0 sm:$0xff] }
  0x22   :  { %1780 = vmatmul.mubr.msk.f32.gmra.mrb[6].mxu1 %vm115_vm1, %v69_v11 }
  0x23   :  { %1953 = vmatpush3.bf16.msra.mxu0 %v1952_v10  ;;  %1790 = vmatprep.mubr.msk.f32.mxu1 %vm2118_vm4, %v2119_v13 }
  0x24   :  { %1998 = vmatprep.subr.bf16.mxu0 %v2117_v54 }
  0x26   :  { %209 = vmatmul.mubr.f32.vlgmr.msra.gmra.mrb[0].mxu0 %v46_v12  ;;  %1791 = vmatmul.mubr.f32.vlgmr.msra.gmra.mrb[8].mxu1 %v2119_v13 }
  0x27   :  { %213 = vmatprep.mubr.f32.mxu0 %v50_v14  ;;  %1976 = vmatpush3.bf16.msra.mxu1 %v2315_v55 }
  0x28   :  { %1977 = vmatprep.subr.bf16.mxu1 %v2117_v54  ;;  %1801 = vmatprep.mubr.msk.f32.mxu1 %vm2118_vm4, %v2119_v13 }
  0x29   :  { %2000 = vmatpush3.bf16.msra.mxu0 %v2315_v55 }
  0x2a   :  { %214 = vmatmul.mubr.f32.gmra.mrb[2].mxu0 %v49_v15  ;;  %2001 = vmatprep.subr.bf16.mxu0 %v2117_v54 }
  0x2b   :  { %218 = vmatprep.mubr.f32.mxu0 %v53_v16  ;;  %1979 = vmatpush3.bf16.msra.mxu1 %v2341_v1 }
  0x2c   :  { %1980 = vmatprep.subr.bf16.mxu1 %v2117_v54 }
  0x2d   :  { %2003 = vmatpush3.bf16.msra.mxu0 %v2341_v1 }
  0x2e   :  { %219 = vmatmul.mubr.f32.gmra.mrb[4].mxu0 %v52_v17  ;;  %2010 = vmatprep.subr.bf16.mxu0 %v2117_v54 }
  0x2f   :  { %223 = vmatprep.mubr.f32.mxu0 %v56_v18 }
  0x32   :  { %224 = vmatmul.mubr.f32.gmra.mrb[6].mxu0 %v55_v19 }
  0x33   :  { %228 = vmatprep.mubr.f32.mxu0 %v59_v20 }
  0x36   :  { %229 = vmatmul.mubr.f32.gmra.mrb[8].mxu0 %v58_v21 }
  0x37   :  { %233 = vmatprep.mubr.f32.mxu0 %v62_v22 }
  0x3a   :  { %234 = vmatmul.mubr.f32.gmra.mrb[10].mxu0 %v61_v23 }
  0x3b   :  { %238 = vmatprep.mubr.f32.mxu0 %v65_v24 }
  0x3e   :  { %239 = vmatmul.mubr.f32.gmra.mrb[12].mxu0 %v64_v25 }
  0x3f   :  { %243 = vmatprep.mubr.f32.mxu0 %v68_v26 }
  0x42   :  { %244 = vmatmul.mubr.f32.gmra.mrb[14].mxu0 %v67_v27 }
  0x43   :  { %1845 = vmatprep.mubr.msk.f32.mxu0 %vm2118_vm4, %v2119_v13 }
  0xe9   :  { %v1772_v28 = vpop.f32.mrb[0].mxu1 }
  0xea   :  { %v315_v29 = vpop.f32.mrb[1].mxu1 }
  0xed   :  { %v1775_v30 = vpop.f32.mrb[2].mxu1 }
  0xee   :  { %v325_v31 = vpop.f32.mrb[3].mxu1 }
  0xf1   :  { %v1778_v32 = vpop.f32.mrb[4].mxu1 }
  0xf2   :  { %v335_v33 = vpop.f32.mrb[5].mxu1 }
  0xf5   :  { %v1781_v34 = vpop.f32.mrb[6].mxu1 }
  0xf6   :  { %v345_v35 = vpop.f32.mrb[7].mxu1 }
  0xf9   :  { %v1651_v36 = vpop.f32.mrb[0].mxu0  ;;  %v428_v37 = vpop.f32.mrb[8].mxu1 }
  0xfa   :  { %v1652_v39 = vpop.f32.mrb[1].mxu0  ;;  %v1792_v40 = vpop.f32.mrb[9].mxu1 }
  0xfb   :  { %v1653_v41 = vadd.f32 %v1652_v39, %v1651_v36 }
  0xfd   :  { %v211_v42 = vadd.f32 %v1653_v41, %v1580_v38  ;;  %v1654_v43 = vpop.f32.mrb[2].mxu0 }
  0xfe   :  { %v1655_v44 = vpop.f32.mrb[3].mxu0 }
  0xff   :  { %v1656_v45 = vadd.f32 %v1655_v44, %v1654_v43  ;;  %v316_v46 = vadd.f32 %v315_v29, %v211_v42  ;;  %v1005_v42 = vld [vmem:[%s2608_s4 + $0x10] sm:$0xff] }
 0x101   :  { %v216_v47 = vadd.f32 %v1656_v45, %v1580_v38  ;;  %v432_v48 = vadd.f32 %v428_v37, %v316_v46  ;;  %v1657_v49 = vpop.f32.mrb[4].mxu0  ;;  %v1003_v37 = vld [vmem:[%s2608_s4] sm:$0xff] }
 0x102   :  { %v1658_v50 = vpop.f32.mrb[5].mxu0 }
 0x103   :  { %2042 = vtanh.f32 %v432_v48  ;;  %v1659_v51 = vadd.f32 %v1658_v50, %v1657_v49  ;;  %v321_v52 = vadd.f32 %v1772_v28, %v216_v47 }
 0x105   :  { %v221_v53 = vadd.f32 %v1659_v51, %v1580_v38  ;;  %v1660_v56 = vpop.f32.mrb[6].mxu0  ;;  %v1151_v51 = vld [vmem:[%s2610_s6] sm:$0xff] }
 0x106   :  { %v1661_v57 = vpop.f32.mrb[7].mxu0 }
 0x107   :  { %v1662_v58 = vadd.f32 %v1661_v57, %v1660_v56  ;;  %v326_v59 = vadd.f32 %v325_v31, %v221_v53 }
 0x109   :  { %v226_v60 = vadd.f32 %v1662_v58, %v1580_v38  ;;  %v1663_v61 = vpop.f32.mrb[8].mxu0 }
 0x10a   :  { %v1664_v62 = vpop.f32.mrb[9].mxu0 }
 0x10b   :  { %v1665_v63 = vadd.f32 %v1664_v62, %v1663_v61  ;;  %v331_v0 = vadd.f32 %v1775_v30, %v226_v60 }
 0x10d   :  { %v2043_v2 = vpop.eup %2042  ;;  %v231_v3 = vadd.f32 %v1665_v63, %v1580_v38  ;;  %v1666_v4 = vpop.f32.mrb[10].mxu0 }
 0x10e   :  { %434 = vst.msk [vmem:[#allocation2] sm:$0xff] %vm358_vm5, %v2043_v2  ;;  %v1667_v5 = vpop.f32.mrb[11].mxu0  ;;  %1802 = vmatmul.mubr.msk.f32.vlgmr.msra.gmra.mrb[10].mxu1 %vm358_vm5, %v2043_v2 }
 0x10f   :  { %v1668_v6 = vadd.f32 %v1667_v5, %v1666_v4  ;;  %1982 = vmatpush3.bf16.msra.mxu1 %v2315_v55  ;;  %1812 = vmatprep.mubr.msk.f32.mxu1 %vm2118_vm4, %v2119_v13  ;;  %v336_v7 = vadd.f32 %v335_v33, %v231_v3 }
 0x110   :  { %1983 = vmatprep.subr.bf16.mxu1 %v2117_v54 }
 0x111   :  { %v236_v8 = vadd.f32 %v1668_v6, %v1580_v38  ;;  %v1669_v9 = vpop.f32.mrb[12].mxu0 }
 0x112   :  { %v1670_v10 = vpop.f32.mrb[13].mxu0 }
 0x113   :  { %v1671_v11 = vadd.f32 %v1670_v10, %v1669_v9  ;;  %1985 = vmatpush3.bf16.msra.mxu1 %v2341_v1  ;;  %v341_v12 = vadd.f32 %v1778_v32, %v236_v8 }
 0x114   :  { %1986 = vmatprep.subr.bf16.mxu1 %v2117_v54 }
 0x115   :  { %v241_v14 = vadd.f32 %v1671_v11, %v1580_v38  ;;  %v1672_v15 = vpop.f32.mrb[14].mxu0  ;;  %v2492_v45 = vld [vmem:[#allocation2] sm:$0xff] }
 0x116   :  { %v1673_v16 = vpop.f32.mrb[15].mxu0 }
 0x117   :  { %v1674_v17 = vadd.f32 %v1673_v16, %v1672_v15  ;;  %v2444_v18 = vadd.f32 %v345_v35, %v241_v14 }
 0x119   :  { %v246_v19 = vadd.f32 %v1674_v17, %v1580_v38  ;;  %v1004_v38 = vld [vmem:[%s2608_s4 + $0x8] sm:$0xff] }
 0x11a   :  { %v2016_v39 = vpack.c.bf16 %v1004_v38, %v1003_v37 }
 0x11b   :  { %v2446_v20 = vadd.f32 %v1781_v34, %v246_v19 }
 0x1e1   :  { %v508_v21 = vpop.f32.mrb[10].mxu1 }
 0x1e2   :  { %v512_v22 = vadd.f32 %v508_v21, %v321_v52  ;;  %v1803_v23 = vpop.f32.mrb[11].mxu1  ;;  %v1152_v52 = vld [vmem:[%s2610_s6 + $0x8] sm:$0xff] }
 0x1e3   :  { %v2024_v53 = vpack.c.bf16 %v1152_v52, %v1151_v51  ;;  %v2120_v51 = vmov 0  }
 0x1e4   :  { %2044 = vtanh.f32 %v512_v22  ;;  %v1606_v22 = vld [vmem:[#allocation3] ss:$0 sm:$0xff]  ;;  %2041 = vset.pattern.permute.xlu1 %v2120_v51  ;;  %2040 = vset.pattern.permute.xlu0 %v2120_v51 }
 0x1ee   :  { %v2045_v24 = vpop.eup %2044 }
 0x1ef   :  { %514 = vst.msk [vmem:[#allocation2 + $0x8] sm:$0xff] %vm358_vm5, %v2045_v24  ;;  %1813 = vmatmul.mubr.msk.f32.vlgmr.msra.gmra.mrb[12].mxu1 %vm358_vm5, %v2045_v24 }
 0x1f0   :  { %1988 = vmatpush3.bf16.msra.mxu1 %v2315_v55  ;;  %1823 = vmatprep.mubr.msk.f32.mxu1 %vm2118_vm4, %v2119_v13 }
 0x1f1   :  { %1989 = vmatprep.subr.bf16.mxu1 %v2117_v54 }
 0x1f4   :  { %1991 = vmatpush3.bf16.msra.mxu1 %v2341_v1 }
 0x1f5   :  { %1992 = vmatprep.subr.bf16.mxu1 %v2117_v54 }
 0x1f6   :  { %v2497_v46 = vld [vmem:[#allocation2 + $0x8] sm:$0xff] }
 0x2c2   :  { %v588_v25 = vpop.f32.mrb[12].mxu1 }
 0x2c3   :  { %v592_v26 = vadd.f32 %v588_v25, %v326_v59  ;;  %v1814_v27 = vpop.f32.mrb[13].mxu1  ;;  %v2527_v59 = vld [vmem:[%s2609_s5] ss:$0 sm:$0xff] }
 0x2c5   :  { %2046 = vtanh.f32 %v592_v26 }
 0x2cf   :  { %v2047_v28 = vpop.eup %2046 }
 0x2d0   :  { %594 = vst.msk [vmem:[#allocation2 + $0x10] sm:$0xff] %vm358_vm5, %v2047_v28  ;;  %1824 = vmatmul.mubr.msk.f32.vlgmr.msra.gmra.mrb[14].mxu1 %vm358_vm5, %v2047_v28 }
 0x2d1   :  { %1994 = vmatpush3.bf16.msra.mxu1 %v2315_v55  ;;  %1834 = vmatprep.mubr.msk.f32.mxu1 %vm2118_vm4, %v2119_v13 }
 0x2d2   :  { %1995 = vmatprep.subr.bf16.mxu1 %v2117_v54 }
 0x2d5   :  { %1997 = vmatpush3.bf16.msra.mxu1 %v2341_v1 }
 0x2d6   :  { %2004 = vmatprep.subr.bf16.mxu1 %v2117_v54 }
 0x2d7   :  { %v2501_v47 = vld [vmem:[#allocation2 + $0x10] sm:$0xff] }
 0x3a3   :  { %v668_v29 = vpop.f32.mrb[14].mxu1 }
 0x3a4   :  { %v672_v30 = vadd.f32 %v668_v29, %v331_v0  ;;  %v1825_v31 = vpop.f32.mrb[15].mxu1 }
 0x3a6   :  { %2048 = vtanh.f32 %v672_v30 }
 0x3b0   :  { %v2049_v32 = vpop.eup %2048 }
 0x3b1   :  { %674 = vst.msk [vmem:[#allocation2 + $0x18] sm:$0xff] %vm358_vm5, %v2049_v32  ;;  %1835 = vmatmul.mubr.msk.f32.vlgmr.msra.gmra.mrb[16].mxu1 %vm358_vm5, %v2049_v32 }
 0x3b2   :  { %2006 = vmatpush3.bf16.msra.mxu1 %v2315_v55  ;;  %1856 = vmatprep.mubr.msk.f32.mxu1 %vm2118_vm4, %v2119_v13 }
 0x3b3   :  { %2007 = vmatprep.subr.bf16.mxu1 %v2117_v54 }
 0x3b6   :  { %2009 = vmatpush3.bf16.msra.mxu1 %v2341_v1 }
 0x3b7   :  { %2017 = vmatprep.subr.bf16.mxu1 %v2016_v39 }
 0x3b8   :  { %v2505_v48 = vld [vmem:[#allocation2 + $0x18] sm:$0xff] }
 0x484   :  { %v748_v33 = vpop.f32.mrb[16].mxu1 }
 0x485   :  { %v752_v34 = vadd.f32 %v748_v33, %v336_v7  ;;  %v1836_v35 = vpop.f32.mrb[17].mxu1 }
 0x487   :  { %2050 = vtanh.f32 %v752_v34 }
 0x491   :  { %v2051_v36 = vpop.eup %2050 }
 0x492   :  { %754 = vst.msk [vmem:[#allocation2 + $0x20] sm:$0xff] %vm358_vm5, %v2051_v36  ;;  %1846 = vmatmul.mubr.msk.f32.vlgmr.msra.gmra.mrb[16].mxu0 %vm358_vm5, %v2051_v36 }
 0x493   :  { %2012 = vmatpush3.bf16.msra.mxu0 %v2315_v55  ;;  %1867 = vmatprep.mubr.msk.f32.mxu0 %vm2118_vm4, %v2119_v13 }
 0x494   :  { %2013 = vmatprep.subr.bf16.mxu0 %v2117_v54 }
 0x497   :  { %2015 = vmatpush3.bf16.msra.mxu0 %v2341_v1  ;;  %v1006_v1 = vld [vmem:[%s2608_s4 + $0x18] sm:$0xff] }
 0x498   :  { %v2020_v43 = vpack.c.bf16 %v1006_v1, %v1005_v42  ;;  %2025 = vmatprep.subr.bf16.mxu0 %v2024_v53 }
 0x499   :  { %v2509_v49 = vld [vmem:[#allocation2 + $0x20] sm:$0xff] }
 0x565   :  { %v828_v40 = vpop.f32.mrb[16].mxu0 }
 0x566   :  { %v832_v41 = vadd.f32 %v828_v40, %v341_v12  ;;  %v1847_v55 = vpop.f32.mrb[17].mxu0 }
 0x568   :  { %2052 = vtanh.f32 %v832_v41 }
 0x572   :  { %v2053_v44 = vpop.eup %2052 }
 0x573   :  { %834 = vst.msk [vmem:[#allocation2 + $0x28] sm:$0xff] %vm358_vm5, %v2053_v44  ;;  %1857 = vmatmul.mubr.msk.f32.vlgmr.msra.gmra.mrb[18].mxu1 %vm358_vm5, %v2053_v44 }
 0x574   :  { %2019 = vmatpush3.bf16.msra.mxu1 %v2016_v39  ;;  %1878 = vmatprep.mubr.msk.f32.mxu1 %vm358_vm5, %v2492_v45 }
 0x575   :  { %2021 = vmatprep.subr.bf16.mxu1 %v2020_v43 }
 0x578   :  { %2023 = vmatpush3.bf16.msra.mxu1 %v2020_v43 }
 0x579   :  { %1917 = vmatprep.subr.mxu1 %v2119_v13 }
 0x57a   :  { %v2513_v50 = vld [vmem:[#allocation2 + $0x28] sm:$0xff] }
 0x57b   :  { %1879 = vmatmul.mubr.msk.f32.vlgmr.msra.gmra.mrb[20].mxu1 %vm358_vm5, %v2497_v46 }
 0x57c   :  { %1881 = vmatprep.mubr.msk.f32.mxu1 %vm358_vm5, %v2501_v47 }
 0x57f   :  { %1882 = vmatmul.mubr.msk.f32.gmra.mrb[22].mxu1 %vm358_vm5, %v2505_v48 }
 0x580   :  { %1884 = vmatprep.mubr.msk.f32.mxu1 %vm358_vm5, %v2509_v49 }
 0x583   :  { %1885 = vmatmul.mubr.msk.f32.gmra.mrb[24].mxu1 %vm358_vm5, %v2513_v50 }
 0x646   :  { %v908_v56 = vpop.f32.mrb[18].mxu1 }
 0x647   :  { %v912_v57 = vadd.f32 %v908_v56, %v2444_v18  ;;  %v1858_v58 = vpop.f32.mrb[19].mxu1 }
 0x649   :  { %2054 = vtanh.f32 %v912_v57 }
 0x64e   :  { %v1880_v60 = vpop.f32.mrb[20].mxu1 }
 0x64f   :  { %v1110_v61 = vadd.f32 %v1880_v60, %v2527_v59  ;;  %v1104_v62 = vpop.f32.mrb[21].mxu1 }
 0x650   :  { %v1105_v63 = vadd.f32 %v2527_v59, %v1104_v62 }
 0x652   :  { %2056 = vtanh.f32 %v1105_v63  ;;  %v1883_v0 = vpop.f32.mrb[22].mxu1 }
 0x653   :  { %v2055_v2 = vpop.eup %2054  ;;  %2058 = vtanh.f32 %v1110_v61  ;;  %v1120_v3 = vadd.f32 %v1883_v0, %v2527_v59  ;;  %v1114_v4 = vpop.f32.mrb[23].mxu1 }
 0x654   :  { %914 = vst.msk [vmem:[#allocation2 + $0x30] sm:$0xff] %vm358_vm5, %v2055_v2  ;;  %v1115_v5 = vadd.f32 %v2527_v59, %v1114_v4  ;;  %1868 = vmatmul.mubr.msk.f32.vlgmr.msra.gmra.mrb[18].mxu0 %vm358_vm5, %v2055_v2 }
 0x655   :  { %2027 = vmatpush3.bf16.msra.mxu0 %v2024_v53 }
 0x656   :  { %2060 = vtanh.f32 %v1115_v5  ;;  %v1886_v6 = vpop.f32.mrb[24].mxu1  ;;  %2028 = vmatprep.subr.bf16.mxu0 %v2117_v54 }
 0x657   :  { %2062 = vtanh.f32 %v1120_v3  ;;  %v1130_v7 = vadd.f32 %v1886_v6, %v2527_v59  ;;  %v1124_v8 = vpop.f32.mrb[25].mxu1 }
 0x658   :  { %v1125_v9 = vadd.f32 %v2527_v59, %v1124_v8 }
 0x65a   :  { %2064 = vtanh.f32 %v1125_v9 }
 0x65b   :  { %2066 = vtanh.f32 %v1130_v7  ;;  %v2538_v10 = vld [vmem:[#allocation2 + $0x30] sm:$0xff] }
 0x65c   :  { %v2057_v11 = vpop.eup %2056  ;;  %1887 = vmatprep.mubr.msk.f32.mxu1 %vm358_vm5, %v2538_v10 }
 0x65d   :  { %v2059_v12 = vpop.eup %2058  ;;  %1894 = vmatprep.mubr.msk.f32.mxu0 %vm1160_vm6, %v2057_v11 }
 0x65e   :  { %1895 = vmatmul.mubr.msk.f32.vlgmr.msra.gmra.mrb[20].mxu0 %vm1160_vm6, %v2059_v12 }
 0x660   :  { %v2061_v14 = vpop.eup %2060 }
 0x661   :  { %v2063_v15 = vpop.eup %2062  ;;  %1897 = vmatprep.mubr.msk.f32.mxu0 %vm1160_vm6, %v2061_v14 }
 0x662   :  { %1898 = vmatmul.mubr.msk.f32.gmra.mrb[22].mxu0 %vm1160_vm6, %v2063_v15 }
 0x664   :  { %v2065_v16 = vpop.eup %2064 }
 0x665   :  { %v2067_v17 = vpop.eup %2066  ;;  %1900 = vmatprep.mubr.msk.f32.mxu0 %vm1160_vm6, %v2065_v16 }
 0x666   :  { %1901 = vmatmul.mubr.msk.f32.gmra.mrb[24].mxu0 %vm1160_vm6, %v2067_v17 }
 0x727   :  { %v988_v18 = vpop.f32.mrb[18].mxu0 }
 0x728   :  { %v992_v19 = vadd.f32 %v988_v18, %v2446_v20  ;;  %v1869_v21 = vpop.f32.mrb[19].mxu0 }
 0x72a   :  { %2068 = vtanh.f32 %v992_v19 }
 0x731   :  { %v1896_v23 = vpop.f32.mrb[20].mxu0 }
 0x732   :  { %v1257_v24 = vadd.f32 %v1896_v23, %v1606_v22  ;;  %v1251_v25 = vpop.f32.mrb[21].mxu0 }
 0x733   :  { %v1252_v26 = vadd.f32 %v1606_v22, %v1251_v25 }
 0x734   :  { %v2069_v27 = vpop.eup %2068 }
 0x735   :  { %994 = vst.msk [vmem:[#allocation2 + $0x38] sm:$0xff] %vm358_vm5, %v2069_v27  ;;  %v1290_v28 = vmax.f32 %v1252_v26, %v1257_v24  ;;  %v1899_v29 = vpop.f32.mrb[22].mxu0 }
 0x736   :  { %v1261_v30 = vpop.f32.mrb[23].mxu0  ;;  %v1267_v32 = vadd.f32 %v1899_v29, %v1606_v22 }
 0x737   :  { %v1262_v31 = vadd.f32 %v1606_v22, %v1261_v30 }
 0x739   :  { %v1291_v33 = vmax.f32 %v1290_v28, %v1262_v31  ;;  %v1902_v34 = vpop.f32.mrb[24].mxu0 }
 0x73a   :  { %v1271_v35 = vpop.f32.mrb[25].mxu0  ;;  %v1277_v38 = vadd.f32 %v1902_v34, %v1606_v22 }
 0x73b   :  { %v1272_v36 = vadd.f32 %v1606_v22, %v1271_v35  ;;  %v1292_v20 = vmax.f32 %v1291_v33, %v1267_v32 }
 0x73c   :  { %v2550_v37 = vld [vmem:[#allocation2 + $0x38] sm:$0xff] }
 0x73d   :  { %v1293_v39 = vmax.f32 %v1292_v20, %v1272_v36  ;;  %1888 = vmatmul.mubr.msk.f32.gmra.mrb[26].mxu1 %vm358_vm5, %v2550_v37 }
 0x73e   :  { %1919 = vmatprep.mubr.msk.f32.mxu1 %vm2118_vm4, %v2119_v13 }
 0x73f   :  { %v1294_v40 = vmax.f32 %v1293_v39, %v1277_v38  ;;  %v1392_v39 = vld [vmem:[%s2612_s8] sm:$0xff] }
 0x810   :  { %v1889_v41 = vpop.f32.mrb[26].mxu1 }
 0x811   :  { %v1140_v55 = vadd.f32 %v1889_v41, %v2527_v59  ;;  %v1134_v42 = vpop.f32.mrb[27].mxu1  ;;  %v1478_v41 = vld [vmem:[#allocation4] sm:$0x1] }
 0x812   :  { %v1135_v1 = vadd.f32 %v2527_v59, %v1134_v42  ;;  %v1394_v42 = vld [vmem:[%s2612_s8 + $0x10] sm:$0xff] }
 0x814   :  { %2070 = vtanh.f32 %v1135_v1  ;;  %v1395_v1 = vld [vmem:[%s2612_s8 + $0x18] sm:$0xff] }
 0x815   :  { %2072 = vtanh.f32 %v1140_v55 }
 0x81e   :  { %v2071_v43 = vpop.eup %2070 }
 0x81f   :  { %v2073_v44 = vpop.eup %2072  ;;  %1903 = vmatprep.mubr.msk.f32.mxu0 %vm1160_vm6, %v2071_v43  ;;  %v2032_v43 = vpack.c.bf16 %v1395_v1, %v1394_v42 }
 0x820   :  { %1904 = vmatmul.mubr.msk.f32.gmra.mrb[26].mxu0 %vm1160_vm6, %v2073_v44 }
 0x821   :  { %1914 = vmatprep.mubr.msk.f32.mxu0 %vm2118_vm4, %v2119_v13 }
 0x8f3   :  { %v1905_v52 = vpop.f32.mrb[26].mxu0 }
 0x8f4   :  { %v1281_v53 = vpop.f32.mrb[27].mxu0  ;;  %v1287_v57 = vadd.f32 %v1905_v52, %v1606_v22 }
 0x8f5   :  { %v1282_v56 = vadd.f32 %v1606_v22, %v1281_v53 }
 0x8f7   :  { %v1295_v58 = vmax.f32 %v1294_v40, %v1282_v56  ;;  %v1393_v40 = vld [vmem:[%s2612_s8 + $0x8] sm:$0xff] }
 0x8f8   :  { %v2029_v55 = vpack.c.bf16 %v1393_v40, %v1392_v39 }
 0x8f9   :  { %v1296_v59 = vmax.f32 %v1295_v58, %v1287_v57 }
 0x8fa   :  { %2030 = vmatpush3.bf16.msra.mxu0 %v2029_v55 }
 0x8fb   :  { %v1297_v60 = vsub.f32 %v1252_v26, %v1296_v59  ;;  %v1300_v61 = vsub.f32 %v1257_v24, %v1296_v59  ;;  %v1306_v62 = vsub.f32 %v1267_v32, %v1296_v59  ;;  %v1309_v63 = vsub.f32 %v1272_v36, %v1296_v59  ;;  %2031 = vmatprep.subr.bf16.mxu0 %v2117_v54 }
 0x8fc   :  { %v1312_v0 = vsub.f32 %v1277_v38, %v1296_v59  ;;  %v1315_v2 = vsub.f32 %v1282_v56, %v1296_v59  ;;  %v1318_v3 = vsub.f32 %v1287_v57, %v1296_v59  ;;  %v1303_v4 = vsub.f32 %v1262_v31, %v1296_v59 }
 0x8fd   :  { %v1298_v5 = vmul.f32 1.442695, %v1297_v60  ;;  %v1301_v6 = vmul.f32 1.442695, %v1300_v61  ;;  %v1307_v7 = vmul.f32 1.442695, %v1306_v62 }
 0x8fe   :  { %v1304_v13 = vmul.f32 1.442695, %v1303_v4  ;;  %v1310_v8 = vmul.f32 1.442695, %v1309_v63  ;;  %v1313_v9 = vmul.f32 1.442695, %v1312_v0  ;;  %2033 = vmatpush3.bf16.msra.mxu0 %v2032_v43 }
 0x8ff   :  { %2074 = vpow2.f32 %v1298_v5  ;;  %v1316_v11 = vmul.f32 1.442695, %v1315_v2  ;;  %v1319_v12 = vmul.f32 1.442695, %v1318_v3 }
 0x900   :  { %2076 = vpow2.f32 %v1301_v6 }
 0x901   :  { %2078 = vpow2.f32 %v1304_v13 }
 0x902   :  { %2080 = vpow2.f32 %v1307_v7 }
 0x903   :  { %2082 = vpow2.f32 %v1310_v8 }
 0x904   :  { %2084 = vpow2.f32 %v1313_v9 }
 0x905   :  { %2086 = vpow2.f32 %v1316_v11 }
 0x906   :  { %2088 = vpow2.f32 %v1319_v12 }
 0x909   :  { %v2075_v14 = vpop.eup %2074 }
 0x90a   :  { %v2077_v15 = vpop.eup %2076 }
 0x90b   :  { %v1321_v16 = vadd.f32 %v2077_v15, %v2075_v14  ;;  %v2079_v17 = vpop.eup %2078 }
 0x90c   :  { %v2081_v19 = vpop.eup %2080 }
 0x90d   :  { %v1322_v18 = vadd.f32 %v2079_v17, %v1321_v16  ;;  %v2083_v22 = vpop.eup %2082 }
 0x90e   :  { %v2085_v24 = vpop.eup %2084 }
 0x90f   :  { %v1323_v21 = vadd.f32 %v2081_v19, %v1322_v18  ;;  %v2087_v26 = vpop.eup %2086 }
 0x910   :  { %v2089_v28 = vpop.eup %2088 }
 0x911   :  { %v1324_v23 = vadd.f32 %v2083_v22, %v1323_v21 }
 0x913   :  { %v1325_v25 = vadd.f32 %v2085_v24, %v1324_v23 }
 0x915   :  { %v1326_v27 = vadd.f32 %v2087_v26, %v1325_v25 }
 0x917   :  { %v1327_v29 = vadd.f32 %v2089_v28, %v1326_v27 }
 0x919   :  { %2090 = vrcp.f32 %v1327_v29 }
 0x923   :  { %v2091_v30 = vpop.eup %2090 }
 0x924   :  { %v1344_v31 = vmul.f32 %v2091_v30, %v2079_v17  ;;  %v1329_v32 = vmul.f32 %v2091_v30, %v2075_v14  ;;  %v1352_v33 = vmul.f32 %v2091_v30, %v2081_v19  ;;  %v1336_v34 = vmul.f32 %v2091_v30, %v2077_v15 }
 0x925   :  { %v1368_v35 = vmul.f32 %v2091_v30, %v2085_v24  ;;  %v1360_v36 = vmul.f32 %v2091_v30, %v2083_v22  ;;  %v1384_v20 = vmul.f32 %v2091_v30, %v2089_v28  ;;  %v1376_v38 = vmul.f32 %v2091_v30, %v2087_v26 }
 0x926   :  { %1347 = vperm.xlu1 %2041, %v1344_v31   ;;  %1332 = vperm.xlu0 %2040, %v1329_v32  }
 0x92a   :  { %1355 = vperm.xlu1 %2041, %v1352_v33   ;;  %1339 = vperm.xlu0 %2040, %v1336_v34  }
 0x92e   :  { %1371 = vperm.xlu1 %2041, %v1368_v35   ;;  %1363 = vperm.xlu0 %2040, %v1360_v36  }
 0x932   :  { %1387 = vperm.xlu1 %2041, %v1384_v20   ;;  %1379 = vperm.xlu0 %2040, %v1376_v38  }
 0x936   :  { %1481 = vperm.xlu0 %2040, %v1478_v41  }
 0x9a5   :  { %v1348_v44 = vpop.permute.xlu1 %1347  ;;  %v1333_v51 = vpop.permute.xlu0 %1332 }
 0x9a6   :  { %v1335_v56 = vmul.f32 %v1333_v51, %v2492_v45  ;;  %v1350_v54 = vmul.f32 %v1348_v44, %v2501_v47 }
 0x9a9   :  { %v1356_v52 = vpop.permute.xlu1 %1355  ;;  %v1340_v53 = vpop.permute.xlu0 %1339 }
 0x9aa   :  { %v1342_v57 = vmul.f32 %v1340_v53, %v2497_v46  ;;  %v1358_v61 = vmul.f32 %v1356_v52, %v2505_v48  ;;  %v1615_v48 = vld [vmem:[%s2613_s9] ss:$0 sm:$0xff]  ;;  %s2092_s9 = scalar_lea.vmem %s1573_s11, 16 }
 0x9ab   :  { %p2093_p0 = scmp.ne.s32.totalorder %s1573_s11, %s2092_s9  ;;  %p2098_p2 = scmp.lt.s32.totalorder %s2096_s0, %s2092_s9 }
 0x9ac   :  { %v1343_v58 = vadd.f32 %v1342_v57, %v1335_v56 }
 0x9ad   :  { %v1372_v59 = vpop.permute.xlu1 %1371  ;;  %v1364_v60 = vpop.permute.xlu0 %1363  ;;  %p2099_p3 = por %p2098_p2, %p2097_p1 }
 0x9ae   :  { %v1351_v62 = vadd.f32 %v1350_v54, %v1343_v58  ;;  %v1366_v0 = vmul.f32 %v1364_v60, %v2509_v49  ;;  %v1374_v3 = vmul.f32 %v1372_v59, %v2513_v50  ;;  %v1477_v50 = vld [vmem:[%s2614_s10] sm:$0x1] }
 0x9af   :  { %p2100_p4 = pnand %p2099_p3, %p2093_p0 }
 0x9b0   :  { %v1359_v63 = vadd.f32 %v1358_v61, %v1351_v62 }
 0x9b1   :  { %v1380_v2 = vpop.permute.xlu0 %1379  ;;  %v1388_v5 = vpop.permute.xlu1 %1387 }
 0x9b2   :  { %v1367_v4 = vadd.f32 %v1366_v0, %v1359_v63  ;;  %v1382_v45 = vmul.f32 %v1380_v2, %v2538_v10  ;;  %v1390_v46 = vmul.f32 %v1388_v5, %v2550_v37  ;;  %v1484_v10 = vlaneseq }
 0x9b4   :  { %v1375_v6 = vadd.f32 %v1374_v3, %v1367_v4  ;;  %v1485_v37 = vshrl.u32 %v1484_v10, 7 }
 0x9b5   :  { %v1482_v12 = vpop.permute.xlu0 %1481 }
 0x9b6   :  { %v1383_v47 = vadd.f32 %v1382_v45, %v1375_v6  ;;  %v1486_v11 = vsub.s32 0, %v1485_v37 }
 0x9b8   :  { %v1391_v13 = vadd.f32 %v1390_v46, %v1383_v47  ;;  %v1487_v14 = vrot.slane %v1482_v12, %v1486_v11 }
 0x9ba   :  { %1915 = vmatmul.mubr.msk.f32.vlgmr.msra.gmra.mrb[28].mxu0 %vm358_vm5, %v1391_v13 }
 0xa8d   :  { %v1472_v7 = vpop.f32.mrb[28].mxu0 }
 0xa8e   :  { %v1473_v49 = vadd.f32 %v1615_v48, %v1472_v7  ;;  %v1916_v8 = vpop.f32.mrb[29].mxu0 }
 0xa90   :  { %v1476_v9 = vmax.f32 %v1473_v49, 0.0 }
 0xa92   :  { %1918 = vmatpush3.xpose.msk.msra.mxu1 %vm358_vm5, %v1476_v9 }
 0xa95   :  { %1920 = vmatmul.mubr.msk.f32.vlgmr.msra.gmra.mrb[28].mxu1 %vm358_vm5, %v1477_v50 }
 0xb68   :  { %v1560_v15 = vpop.f32.mrb[28].mxu1 }
 0xb69   :  { %v1561_v16 = vadd.f32 %v1560_v15, %v1487_v14  ;;  %v1921_v17 = vpop.f32.mrb[29].mxu1 }
 0xb6b   :  { %1565 = vst.msk [vmem:[#allocation5] sm:$0x1] %vm1564_vm7, %v1561_v16 }
 0xb6c   :  { %2103 = shalt.err (!%p2100_p4)
}
 0xb6d   :  { %s2104_s14 = scalar_lea.hbm %s2615_s12, 16 }
 0xb6e   :  { %p2105_p5 = scmp.ne.s32.totalorder %s2615_s12, %s2104_s14  ;;  %p2108_p6 = scmp.lt.u32.totalorder %s2104_s14, %s2615_s12 }
 0xb70   :  { %p2110_p7 = pnand %p2108_p6, %p2105_p5 }
 0xb72   :  { %2113 = shalt.err (!%p2110_p7)
}
 0xb73   :  { %1575 = dma.vmem_to_hbm [thread:$0]  %s1573_s11, 16, %s2615_s12, [#allocation6]  }
 0xb74   :  { %2114 = dma.done.wait [#allocation6], 16  }
 0xb75   :  { %2115 = vsyncadd [#allocation6], 4294967280 }
 0xb76   :  { %1579 = vsyncpa [#allocation6], 1 }

</bundles_post_ra>
